<compile_context>
chip_gen: v7x
topology: tpu7x:2x2x1
jax: 0.10.0
libtpu: 0.0.40
codegen_flags: <defaults>
</compile_context>

<pallas_src>
import math

import jax
import jax.numpy as jnp
from jax.experimental import pallas as pl
from jax.experimental.pallas import tpu as pltpu


def _conv_kernel_bias(x_ref, w_ref, b_ref, o_ref):
    # x_ref: (tb, K, tn), w_ref: (oc, K), b_ref: (oc, tn), o_ref: (tb, oc, tn)
    w = w_ref[...]
    bv = b_ref[...].astype(jnp.float32)
    for i in range(x_ref.shape[0]):  # static tb, unrolled
        acc = jnp.dot(w, x_ref[i], preferred_element_type=jnp.float32)
        o_ref[i] = (acc + bv).astype(o_ref.dtype)


def _conv_kernel_nobias(x_ref, w_ref, o_ref):
    # x_ref: (tb, K, tn), w_ref: (oc, K), o_ref: (tb, oc, tn)
    w = w_ref[...]
    for i in range(x_ref.shape[0]):  # static tb, unrolled
        acc = jnp.dot(w, x_ref[i], preferred_element_type=jnp.float32)
        o_ref[i] = acc.astype(o_ref.dtype)


def non_overlapping_conv1d(x, weight, bias=None, *, target_block_bytes=2 * 1024 * 1024):
    """Forward pass of NonOverlappingConv1d.

    x      : (bs, cin, d)           float32
    weight : (oc, cin, 1, ps)       float32
    bias   : (1, oc, d // ps) or None
    returns: (bs, oc, d // ps)      float32
    """
    bs, cin, d = x.shape
    oc, cin_w, one, ps = weight.shape
    assert cin_w == cin and one == 1 and d % ps == 0
    npatch = d // ps
    K = cin * ps
    itemsize = 4  # float32

    # ---- tiny constant folding (removes full-tile VPU multiplies in-kernel) --
    # weight (oc, cin, 1, ps) flattens natively to (oc, K) with K-order c*ps+k.
    w_kern = (weight.reshape(oc, K) * (1.0 / math.sqrt(cin))).astype(x.dtype)

    # ---- x relayout: (bs, cin, d) -> (bs, K, npatch) (see TODO at top) -------
    # Contraction axis (c, k) becomes sublane-major; the patch axis is the lane
    # axis, so the kernel output is lane-dense and already in PyTorch order.
    x_kern = jnp.transpose(
        x.reshape(bs, cin, npatch, ps), (0, 1, 3, 2)
    ).reshape(bs, K, npatch)

    # ---- tile selection -------------------------------------------------------
    # Patch tile: full axis (always legal) or a multiple of 128 lanes sized so
    # one block of x (+ out + bias) is ~target_block_bytes.
    per_lane_bytes = (K + oc + (oc if bias is not None else 0)) * itemsize
    tn_budget = max(128, target_block_bytes // per_lane_bytes)
    if npatch <= tn_budget:
        tn = npatch
    else:
        tn = max(128, (min(tn_budget, npatch) // 128) * 128)
    n_ptiles = pl.cdiv(npatch, tn)

    # Batch tile: only when the whole patch axis fits in one block, block
    # several batch elements per grid step (tb divides bs) to amortize
    # per-step overhead for small-npatch / large-bs shapes.
    tb = 1
    if n_ptiles == 1:
        per_batch_bytes = (K + oc) * tn * itemsize
        max_tb = max(1, int(target_block_bytes // max(per_batch_bytes, 1)))
        for cand in range(1, bs + 1):
            if cand <= max_tb and bs % cand == 0:
                tb = cand
    n_btiles = bs // tb

    # ---- specs ----------------------------------------------------------------
    # Grid is (patch_tiles, batch_tiles): batch is the innermost (fastest) axis,
    # so blocks whose index does not depend on it (weight, bias) are not
    # re-DMA'd between consecutive steps.
    in_specs = [
        pl.BlockSpec((tb, K, tn), lambda j, b: (b, 0, j)),
        pl.BlockSpec((oc, K), lambda j, b: (0, 0)),      # grid-invariant
    ]
    args = [x_kern, w_kern]

    if bias is not None:
        b_kern = (bias[0] * 0.1).astype(jnp.float32)     # (oc, npatch)
        in_specs.append(pl.BlockSpec((oc, tn), lambda j, b: (0, j)))  # b-invariant
        args.append(b_kern)
        kernel = _conv_kernel_bias
    else:
        kernel = _conv_kernel_nobias

    out_spec = pl.BlockSpec((tb, oc, tn), lambda j, b: (b, 0, j))

    # ---- VMEM budget (double-buffered blocks + headroom); v5e/v7x-safe --------
    block_bytes = (tb * K * tn + tb * oc * tn + oc * K
                   + (oc * tn if bias is not None else 0)) * itemsize
    vmem_limit = int(min(48 * 1024 * 1024, max(16 * 1024 * 1024, 4 * block_bytes)))

    # ---- cost estimate (mem-bound; lets XLA schedule around the kernel) -------
    flops = 2 * bs * oc * K * npatch
    bytes_accessed = (bs * K * npatch + oc * K + bs * oc * npatch
                      + (oc * npatch if bias is not None else 0)) * itemsize

    out = pl.pallas_call(
        kernel,
        out_shape=jax.ShapeDtypeStruct((bs, oc, npatch), x.dtype),
        grid_spec=pltpu.PrefetchScalarGridSpec(
            num_scalar_prefetch=0,
            grid=(n_ptiles, n_btiles),
            in_specs=in_specs,
            out_specs=out_spec,
        ),
        compiler_params=pltpu.CompilerParams(
            # Both axes are independent tiles -> megacore (v7x) can shard them.
            dimension_semantics=("parallel", "parallel"),
            vmem_limit_bytes=vmem_limit,
        ),
        cost_estimate=pl.CostEstimate(
            flops=flops, transcendentals=0, bytes_accessed=bytes_accessed),
    )(*args)

    # Output is already (bs, oc, npatch) — no transpose needed.
    return out


def _reference(x, weight, bias=None):
    bs, cin, d = x.shape
    oc, _, _, ps = weight.shape
    npatch = d // ps
    xr = x.reshape(bs, 1, cin, npatch, ps)            # (bs,1,cin,npatch,ps)
    wr = weight.reshape(1, oc, cin, 1, ps)            # (1,oc,cin,1,ps)
    out = (xr * wr).sum(axis=(-1, -3)) / math.sqrt(cin)
    if bias is not None:
        out = out + bias * 0.1
    return out


if __name__ == "__main__":
    key = jax.random.PRNGKey(0)

    # --- case 1: shapes consistent with the module's forward, bias=True ------
    bs, cin, d, oc, ps = 2, 4, 16, 8, 4
    out_dim = d // ps
    kx, kw, kb = jax.random.split(key, 3)
    x = jax.random.normal(kx, (bs, cin, d), dtype=jnp.float32)
    weight = jax.random.normal(kw, (oc, cin, 1, ps), dtype=jnp.float32)   # torch.randn
    bias = jax.random.normal(kb, (1, oc, out_dim), dtype=jnp.float32)     # torch.randn

    out = jax.block_until_ready(non_overlapping_conv1d(x, weight, bias))
    ref = _reference(x, weight, bias)
    assert out.shape == (bs, oc, out_dim)
    assert jnp.allclose(out, ref, atol=1e-5, rtol=1e-5)

    # --- case 2: bias=False (default) path ------------------------------------
    out_nb = jax.block_until_ready(non_overlapping_conv1d(x, weight, None))
    ref_nb = _reference(x, weight, None)
    assert out_nb.shape == (bs, oc, out_dim)
    assert jnp.allclose(out_nb, ref_nb, atol=1e-5, rtol=1e-5)

    # --- case 3: odd shapes, exercises batch blocking (tb > 1) ---------------
    bs2, cin2, d2, oc2, ps2 = 4, 3, 24, 5, 3
    out_dim2 = d2 // ps2
    k2x, k2w, k2b = jax.random.split(jax.random.PRNGKey(1), 3)
    x2 = jax.random.normal(k2x, (bs2, cin2, d2), dtype=jnp.float32)
    w2 = jax.random.normal(k2w, (oc2, cin2, 1, ps2), dtype=jnp.float32)
    b2 = jax.random.normal(k2b, (1, oc2, out_dim2), dtype=jnp.float32)

    out2 = jax.block_until_ready(non_overlapping_conv1d(x2, w2, b2))
    ref2 = _reference(x2, w2, b2)
    assert out2.shape == (bs2, oc2, out_dim2)
    assert jnp.allclose(out2, ref2, atol=1e-5, rtol=1e-5)

    print("KERNEL_OK")
</pallas_src>

<mosaic_0001>
module attributes {stable_mosaic.version = 11 : i64} {
  func.func @_conv_kernel_bias(%arg0: i32, %arg1: i32, %arg2: memref<2x16x4xf32, #tpu.memory_space<vmem>>, %arg3: memref<8x16xf32, #tpu.memory_space<vmem>>, %arg4: memref<8x4xf32, #tpu.memory_space<vmem>>, %arg5: memref<2x8x4xf32, #tpu.memory_space<vmem>>) attributes {dimension_semantics = [#tpu.dimension_semantics<parallel>, #tpu.dimension_semantics<parallel>], iteration_bounds = array<i64: 1, 1>, scalar_prefetch = 0 : i64, scratch_operands = 0 : i64, tpu.core_type = #tpu.core_type<tc>, window_params = [{transform_indices = @transform_0, window_bounds = array<i64: 2, 16, 4>}, {pipeline_mode = #tpu.pipeline_mode<synchronous>, transform_indices = @transform_1, window_bounds = array<i64: 8, 16>}, {transform_indices = @transform_2, window_bounds = array<i64: 8, 4>}, {transform_indices = @transform_3, window_bounds = array<i64: 2, 8, 4>}]} {
    %c0 = arith.constant 0 : index
    %c0_0 = arith.constant 0 : index
    %0 = vector.load %arg3[%c0, %c0_0] : memref<8x16xf32, #tpu.memory_space<vmem>>, vector<8x16xf32>
    %c0_1 = arith.constant 0 : index
    %c0_2 = arith.constant 0 : index
    %1 = vector.load %arg4[%c0_1, %c0_2] : memref<8x4xf32, #tpu.memory_space<vmem>>, vector<8x4xf32>
    %c0_3 = arith.constant 0 : index
    %c0_4 = arith.constant 0 : index
    %c0_5 = arith.constant 0 : index
    %2 = vector.load %arg2[%c0_3, %c0_4, %c0_5] : memref<2x16x4xf32, #tpu.memory_space<vmem>>, vector<1x16x4xf32>
    %3 = vector.shape_cast %2 : vector<1x16x4xf32> to vector<16x4xf32>
    %cst = arith.constant dense<0.000000e+00> : vector<8x4xf32>
    %4 = tpu.matmul %0, %3, %cst {dimension_numbers = #tpu.dot_dimension_numbers<[1], [0], [0], [1], [0, 0, 1, 1], [], []>} : vector<8x16xf32>, vector<16x4xf32>, vector<8x4xf32> -> vector<8x4xf32>
    %5 = arith.addf %4, %1 : vector<8x4xf32>
    %c0_6 = arith.constant 0 : index
    %c0_7 = arith.constant 0 : index
    %c0_8 = arith.constant 0 : index
    %6 = vector.load %arg5[%c0_6, %c0_7, %c0_8] : memref<2x8x4xf32, #tpu.memory_space<vmem>>, vector<1x8x4xf32>
    %7 = vector.shape_cast %6 : vector<1x8x4xf32> to vector<8x4xf32>
    %8 = vector.shape_cast %5 : vector<8x4xf32> to vector<1x8x4xf32>
    tpu.vector_store %arg5[%c0_6, %c0_7, %c0_8], %8 {strides = array<i32>} : memref<2x8x4xf32, #tpu.memory_space<vmem>>, vector<1x8x4xf32>,
    %c1 = arith.constant 1 : index
    %c0_9 = arith.constant 0 : index
    %c0_10 = arith.constant 0 : index
    %9 = vector.load %arg2[%c1, %c0_9, %c0_10] : memref<2x16x4xf32, #tpu.memory_space<vmem>>, vector<1x16x4xf32>
    %10 = vector.shape_cast %9 : vector<1x16x4xf32> to vector<16x4xf32>
    %cst_11 = arith.constant dense<0.000000e+00> : vector<8x4xf32>
    %11 = tpu.matmul %0, %10, %cst_11 {dimension_numbers = #tpu.dot_dimension_numbers<[1], [0], [0], [1], [0, 0, 1, 1], [], []>} : vector<8x16xf32>, vector<16x4xf32>, vector<8x4xf32> -> vector<8x4xf32>
    %12 = arith.addf %11, %1 : vector<8x4xf32>
    %c1_12 = arith.constant 1 : index
    %c0_13 = arith.constant 0 : index
    %c0_14 = arith.constant 0 : index
    %13 = vector.load %arg5[%c1_12, %c0_13, %c0_14] : memref<2x8x4xf32, #tpu.memory_space<vmem>>, vector<1x8x4xf32>
    %14 = vector.shape_cast %13 : vector<1x8x4xf32> to vector<8x4xf32>
    %15 = vector.shape_cast %12 : vector<8x4xf32> to vector<1x8x4xf32>
    tpu.vector_store %arg5[%c1_12, %c0_13, %c0_14], %15 {strides = array<i32>} : memref<2x8x4xf32, #tpu.memory_space<vmem>>, vector<1x8x4xf32>,
    return
  }
  func.func @transform_0(%arg0: i32, %arg1: i32) -> (i32, i32, i32) {
    %c0_i32 = arith.constant 0 : i32
    %c0_i32_0 = arith.constant 0 : i32
    return %arg1, %c0_i32, %arg0 : i32, i32, i32
  }
  func.func @transform_1(%arg0: i32, %arg1: i32) -> (i32, i32) {
    %c0_i32 = arith.constant 0 : i32
    %c0_i32_0 = arith.constant 0 : i32
    %c0_i32_1 = arith.constant 0 : i32
    return %c0_i32, %c0_i32_0 : i32, i32
  }
  func.func @transform_2(%arg0: i32, %arg1: i32) -> (i32, i32) {
    %c0_i32 = arith.constant 0 : i32
    %c0_i32_0 = arith.constant 0 : i32
    return %c0_i32, %arg0 : i32, i32
  }
  func.func @transform_3(%arg0: i32, %arg1: i32) -> (i32, i32, i32) {
    %c0_i32 = arith.constant 0 : i32
    %c0_i32_0 = arith.constant 0 : i32
    return %arg1, %c0_i32, %arg0 : i32, i32, i32
  }
}

</mosaic_0001>

<bundles_post_ra>
// kernel: tpu_custom_call.1
= control target key start
LH: loop header
LB: loop body
LE: loop exit
PB: predicated region body
PF: predicated region fallthrough
CT: control target
= control target key end

     0   :  { %v207_v0 = vmov 0.0|0.0   ;;  %vm208_vm0 = vmmov 0   ;;  %v209_v6 = vmov 0.0   ;;  %vm18_vm1 = vcmask 130048   ;;  %s254_s0 = inlined_call_operand.vmem [shape: f32[2,16,4], index: 0, kind: input, shape index: {}]   ;;  %s255_s1 = inlined_call_operand.vmem [shape: f32[8,16], index: 1, kind: input, shape index: {}]   ;;  %s256_s2 = inlined_call_operand.vmem [shape: f32[8,4], index: 2, kind: input, shape index: {}]   ;;  %s257_s3 = inlined_call_operand.vmem [shape: f32[2,8,4], index: 3, kind: output, shape index: {}]  }
   0x1   :  { %198 = vmatprep.subr.bf16.mxu0 %v207_v0  ;;  %201 = vmatprep.subr.bf16.mxu1 %v207_v0  ;;  %v16_v1 = vld [vmem:[%s254_s0] sm:$0xff]  ;;  %v17_v2 = vld [vmem:[%s254_s0 + $0x8] sm:$0xff]  ;;  %v174_v3 = vld [vmem:[%s254_s0 + $0x10] sm:$0xff]  ;;  %vm92_vm2 = vcmask 31744  }
   0x2   :  { %v199_v4 = vpack.c.bf16 %v17_v2, %v16_v1  ;;  %v175_v5 = vld [vmem:[%s254_s0 + $0x18] sm:$0xff]  ;;  %188 = vmatprep.mubr.msk.f32.mxu0 %vm208_vm0, %v209_v6  ;;  %195 = vmatprep.mubr.msk.f32.mxu1 %vm208_vm0, %v209_v6  ;;  %v14_v8 = vld [vmem:[%s255_s1] sm:$0xff] }
   0x3   :  { %v202_v7 = vpack.c.bf16 %v175_v5, %v174_v3  ;;  %v15_v9 = vld [vmem:[%s256_s2] sm:$0xff] }
   0x4   :  { %200 = vmatpush3.bf16.msra.mxu0 %v199_v4 }
   0x5   :  { %203 = vmatpush3.bf16.msra.mxu1 %v202_v7 }
   0x7   :  { %189 = vmatmul.mubr.msk.f32.vlgmr.msra.gmra.mrb[0].mxu0 %vm18_vm1, %v14_v8 }
   0x8   :  { %196 = vmatmul.mubr.msk.f32.vlgmr.msra.gmra.mrb[0].mxu1 %vm18_vm1, %v14_v8 }
  0xda   :  { %v88_v10 = vpop.f32.mrb[0].mxu0 }
  0xdb   :  { %v89_v11 = vadd.f32 %v88_v10, %v15_v9  ;;  %v163_v12 = vpop.f32.mrb[0].mxu1  ;;  %v190_v13 = vpop.f32.mrb[1].mxu0 }
  0xdc   :  { %v164_v14 = vadd.f32 %v163_v12, %v15_v9  ;;  %v197_v15 = vpop.f32.mrb[1].mxu1 }
  0xdd   :  { %93 = vst.msk [vmem:[%s257_s3] sm:$0xff] %vm92_vm2, %v89_v11 }
  0xde   :  { %177 = vst.msk [vmem:[%s257_s3 + $0x8] sm:$0xff] %vm92_vm2, %v164_v14 }

</bundles_post_ra>
